<compile_context>
chip_gen: v6e
topology: v6e:2x2x1
jax: 0.10.0
libtpu: 0.0.40
codegen_flags: <defaults>
</compile_context>

<pallas_src>
import math
import functools

import jax
import jax.numpy as jnp
from jax.experimental import pallas as pl
from jax.experimental.pallas import tpu as pltpu

_INV_SQRT2 = 1.0 / math.sqrt(2.0)
_LANE = 128


def _round_up(x, m):
    return ((x + m - 1) // m) * m


def _vmem_capacity_bytes():
    """Per-core VMEM capacity; conservative 64 MiB (v7x) fallback."""
    try:
        return int(pltpu.get_tpu_info().vmem_capacity_bytes)
    except Exception:
        return 64 * 1024 * 1024


def _lstmcrf_head_kernel(x_ref, w1_ref, b1_ref, w2_ref, b2_ref, o_ref):
    """One row-tile of tokens: Linear(H->H/2) -> GELU(exact) -> Linear(H/2->Lpad)."""
    # reduction_layer: Linear(H -> H/2). Cast activations to bf16 in-kernel so
    # the MXU runs a single-pass bf16 matmul; accumulation stays f32.
    x = x_ref[...].astype(jnp.bfloat16)                              # (TM, H)
    h = jnp.dot(x, w1_ref[...], preferred_element_type=jnp.float32)  # (TM, Hr) f32
    h = h + b1_ref[...]                                              # broadcast (1, Hr)

    # Dropout(0.3): identity at inference.
    # GELU (exact, erf-based — matches torch.nn.GELU default).
    # TODO(synk): jax.nn.gelu(approximate=True) would move this to the EUP slot
    #             but changes numerics vs the torch default.
    h = 0.5 * h * (1.0 + jax.lax.erf(h * _INV_SQRT2))

    # out_layer: Linear(H/2 -> Lpad). bf16 x bf16 on the MXU, f32 accumulation,
    # lane-dense (Lpad = multiple of 128) bf16 store.
    o = jnp.dot(h.astype(jnp.bfloat16), w2_ref[...],
                preferred_element_type=jnp.float32)                  # (TM, Lpad)
    o_ref[...] = (o + b2_ref[...]).astype(o_ref.dtype)


def prepare_params(w1, b1, w2, b2, lane_pad=_LANE):
    """One-time (outside the jitted hot path) parameter prep:
       - W1, W2 cast to bf16 (bf16 MXU passes, halves their VMEM footprint),
       - W2/b2 zero-padded on the output dim to a lane-dense multiple of 128,
       - biases kept f32 (added to the f32 accumulators).
    """
    Hr = w1.shape[1]
    L = w2.shape[1]
    L_pad = _round_up(L, lane_pad)

    w1_p = w1.astype(jnp.bfloat16)                                    # (H, Hr)
    b1_p = b1.reshape(1, Hr).astype(jnp.float32)                      # (1, Hr)
    w2_p = jnp.zeros((Hr, L_pad), jnp.bfloat16).at[:, :L].set(w2.astype(jnp.bfloat16))
    b2_p = jnp.zeros((1, L_pad), jnp.float32).at[0, :L].set(b2.astype(jnp.float32))
    return w1_p, b1_p, w2_p, b2_p


@functools.partial(jax.jit, static_argnames=("num_labels", "row_tile"))
def lstmcrf_forward(text_hidden, w1_p, b1_p, w2_p, b2_p, *, num_labels, row_tile=512):
    """text_hidden: (B, S, H) hidden states from the text encoder (any float dtype).

    w1_p/b1_p/w2_p/b2_p come from prepare_params(). Returns (B, S, num_labels) f32 logits.
    """
    B, S, H = text_hidden.shape
    Hr = w1_p.shape[1]
    L_pad = w2_p.shape[1]
    L = num_labels

    rows = B * S
    x2d = text_hidden.reshape(rows, H)          # no cast / no pad: free reshape only
    x_bytes = x2d.dtype.itemsize

    # --- generation-aware tile selection -------------------------------------
    vmem_cap = _vmem_capacity_bytes()

    def _vmem_bytes(tile):
        # double-buffered x/out tiles + single-buffered resident weights.
        return (2 * tile * H * x_bytes          # x tiles
                + 2 * tile * L_pad * 2          # output tiles (bf16)
                + H * Hr * 2 + Hr * 4           # W1 (bf16) + b1 (f32)
                + Hr * L_pad * 2 + L_pad * 4)   # W2 (bf16) + b2 (f32)

    base_tile = row_tile
    # big-VMEM parts (v5e/v6e, 128 MiB): bigger tiles amortize per-step overhead.
    if vmem_cap >= (96 << 20) and rows >= 8 * base_tile and _vmem_bytes(1024) <= 0.6 * vmem_cap:
        base_tile = max(base_tile, 1024)

    # never bigger than the (8-aligned) problem itself.
    row_tile_eff = min(base_tile, _round_up(rows, 8))

    # keep >= ~4 grid steps when rows allow (v7x dual-TC sharding + DMA/compute
    # pipelining), with a 256-row floor so per-step overhead stays amortized.
    if rows >= 2 * 256:
        step_cap = max(256, _round_up(pl.cdiv(rows, 4), 8))
        row_tile_eff = min(row_tile_eff, step_cap)

    # shrink the tile if it would blow ~60% of this generation's VMEM (v7x: 64 MiB).
    while row_tile_eff > 128 and _vmem_bytes(row_tile_eff) > 0.6 * vmem_cap:
        row_tile_eff = max(128, ((row_tile_eff // 2) // 8) * 8)

    grid = (pl.cdiv(rows, row_tile_eff),)       # partial last block is masked by Pallas

    vmem_limit = int(min(max(2 * _vmem_bytes(row_tile_eff), 16 << 20),
                         0.75 * vmem_cap))

    # constant-index weight/bias blocks: resident, single-buffered.
    def _resident(shape):
        return pl.BlockSpec(shape, lambda i: (0, 0), pipeline_mode=pl.Buffered(1))

    out2d = pl.pallas_call(
        _lstmcrf_head_kernel,
        out_shape=jax.ShapeDtypeStruct((rows, L_pad), jnp.bfloat16),
        grid_spec=pltpu.PrefetchScalarGridSpec(
            num_scalar_prefetch=0,
            grid=grid,
            in_specs=[
                pl.BlockSpec((row_tile_eff, H), lambda i: (i, 0)),   # token rows (tiled)
                _resident((H, Hr)),                                  # W1 (bf16, resident)
                _resident((1, Hr)),                                  # b1
                _resident((Hr, L_pad)),                              # W2 (bf16, lane-padded)
                _resident((1, L_pad)),                               # b2
            ],
            out_specs=pl.BlockSpec((row_tile_eff, L_pad), lambda i: (i, 0)),
        ),
        compiler_params=pltpu.CompilerParams(
            dimension_semantics=("parallel",),
            vmem_limit_bytes=vmem_limit,
        ),
    )(x2d, w1_p, b1_p, w2_p, b2_p)

    # tiny (rows, L) slice + upcast; the heavy lane-padded writeback stayed bf16.
    return out2d[:rows, :L].astype(jnp.float32).reshape(B, S, L)


def _init_linear(key, fan_in, fan_out):
    """Deterministic Linear init mirroring torch.nn.Linear's default bound.
    Weight already transposed to (fan_in, fan_out) for x @ W."""
    kw, kb = jax.random.split(key)
    bound = 1.0 / math.sqrt(fan_in)
    w = jax.random.uniform(kw, (fan_in, fan_out), jnp.float32, -bound, bound)
    b = jax.random.uniform(kb, (fan_out,), jnp.float32, -bound, bound)
    return w, b


def _reference_forward(x, w1, b1, w2, b2):
    """Plain-JAX reference mirroring the kernel's dtype path
    (bf16 inputs/weights, f32 accumulation, bf16 final store)."""
    xb = x.astype(jnp.bfloat16)
    h = jnp.dot(xb, w1.astype(jnp.bfloat16), preferred_element_type=jnp.float32) + b1
    h = 0.5 * h * (1.0 + jax.lax.erf(h * _INV_SQRT2))
    o = jnp.dot(h.astype(jnp.bfloat16), w2.astype(jnp.bfloat16),
                preferred_element_type=jnp.float32) + b2
    return o.astype(jnp.bfloat16).astype(jnp.float32)


if __name__ == "__main__":
    # Small shapes consistent with the module: hidden_size=32 -> H/2=16,
    # num_labels=5, batch=2, seq=8.
    B, S, H, L = 2, 8, 32, 5
    Hr = H // 2

    key = jax.random.PRNGKey(0)
    k_x, k_l1, k_l2 = jax.random.split(key, 3)

    # Stand-in for text_model(text_feats): its (B, S, H) hidden-state output.
    text_hidden = jax.random.normal(k_x, (B, S, H), jnp.float32)

    # reduction_layer Linear(H -> H//2) and out_layer Linear(H//2 -> num_labels)
    w1, b1 = _init_linear(k_l1, H, Hr)
    w2, b2 = _init_linear(k_l2, Hr, L)

    # One-time parameter prep (bf16 W1/W2, lane-padded W2/b2) outside the jit hot path.
    w1_p, b1_p, w2_p, b2_p = prepare_params(w1, b1, w2, b2)

    logits = lstmcrf_forward(text_hidden, w1_p, b1_p, w2_p, b2_p,
                             num_labels=L, row_tile=512)
    logits = jax.block_until_ready(logits)

    # Correctness check against a plain-JAX reference of the same dtype path.
    ref = _reference_forward(text_hidden.reshape(B * S, H), w1, b1, w2, b2)
    ref = ref.reshape(B, S, L)
    assert logits.shape == (B, S, L)
    assert jnp.allclose(logits, ref, atol=5e-3, rtol=5e-3), "mismatch vs reference"

    print("KERNEL_OK")
</pallas_src>

<mosaic_0001>
module attributes {stable_mosaic.version = 11 : i64} {
  func.func @_lstmcrf_head_kernel(%arg0: i32, %arg1: memref<16x32xf32, #tpu.memory_space<vmem>>, %arg2: memref<32x16xbf16, #tpu.memory_space<vmem>>, %arg3: memref<1x16xf32, #tpu.memory_space<vmem>>, %arg4: memref<16x128xbf16, #tpu.memory_space<vmem>>, %arg5: memref<1x128xf32, #tpu.memory_space<vmem>>, %arg6: memref<16x128xbf16, #tpu.memory_space<vmem>>) attributes {dimension_semantics = [#tpu.dimension_semantics<parallel>], iteration_bounds = array<i64: 1>, scalar_prefetch = 0 : i64, scratch_operands = 0 : i64, tpu.core_type = #tpu.core_type<tc>, window_params = [{transform_indices = @transform_0, window_bounds = array<i64: 16, 32>}, {pipeline_mode = #tpu.pipeline_mode<synchronous>, transform_indices = @transform_1, window_bounds = array<i64: 32, 16>}, {pipeline_mode = #tpu.pipeline_mode<synchronous>, transform_indices = @transform_2, window_bounds = array<i64: 1, 16>}, {pipeline_mode = #tpu.pipeline_mode<synchronous>, transform_indices = @transform_3, window_bounds = array<i64: 16, 128>}, {pipeline_mode = #tpu.pipeline_mode<synchronous>, transform_indices = @transform_4, window_bounds = array<i64: 1, 128>}, {transform_indices = @transform_5, window_bounds = array<i64: 16, 128>}]} {
    %c0 = arith.constant 0 : index
    %c0_0 = arith.constant 0 : index
    %0 = vector.load %arg1[%c0, %c0_0] : memref<16x32xf32, #tpu.memory_space<vmem>>, vector<16x32xf32>
    %1 = arith.truncf %0 : vector<16x32xf32> to vector<16x32xbf16>
    %c0_1 = arith.constant 0 : index
    %c0_2 = arith.constant 0 : index
    %2 = vector.load %arg2[%c0_1, %c0_2] : memref<32x16xbf16, #tpu.memory_space<vmem>>, vector<32x16xbf16>
    %cst = arith.constant dense<0.000000e+00> : vector<16x16xf32>
    %3 = tpu.matmul %1, %2, %cst {dimension_numbers = #tpu.dot_dimension_numbers<[1], [0], [0], [1], [0, 0, 1, 1], [], []>} : vector<16x32xbf16>, vector<32x16xbf16>, vector<16x16xf32> -> vector<16x16xf32>
    %c0_3 = arith.constant 0 : index
    %c0_4 = arith.constant 0 : index
    %4 = vector.load %arg3[%c0_3, %c0_4] : memref<1x16xf32, #tpu.memory_space<vmem>>, vector<1x16xf32>
    %5 = vector.broadcast %4 : vector<1x16xf32> to vector<16x16xf32>
    %6 = arith.addf %3, %5 : vector<16x16xf32>
    %cst_5 = arith.constant 5.000000e-01 : f32
    %7 = vector.broadcast %cst_5 : f32 to vector<16x16xf32>
    %8 = arith.mulf %7, %6 : vector<16x16xf32>
    %cst_6 = arith.constant 0.707106769 : f32
    %9 = vector.broadcast %cst_6 : f32 to vector<16x16xf32>
    %10 = arith.mulf %6, %9 : vector<16x16xf32>
    %11 = math.erf %10 : vector<16x16xf32>
    %cst_7 = arith.constant 1.000000e+00 : f32
    %12 = vector.broadcast %cst_7 : f32 to vector<16x16xf32>
    %13 = arith.addf %12, %11 : vector<16x16xf32>
    %14 = arith.mulf %8, %13 : vector<16x16xf32>
    %15 = arith.truncf %14 : vector<16x16xf32> to vector<16x16xbf16>
    %c0_8 = arith.constant 0 : index
    %c0_9 = arith.constant 0 : index
    %16 = vector.load %arg4[%c0_8, %c0_9] : memref<16x128xbf16, #tpu.memory_space<vmem>>, vector<16x128xbf16>
    %cst_10 = arith.constant dense<0.000000e+00> : vector<16x128xf32>
    %17 = tpu.matmul %15, %16, %cst_10 {dimension_numbers = #tpu.dot_dimension_numbers<[1], [0], [0], [1], [0, 0, 1, 1], [], []>} : vector<16x16xbf16>, vector<16x128xbf16>, vector<16x128xf32> -> vector<16x128xf32>
    %c0_11 = arith.constant 0 : index
    %c0_12 = arith.constant 0 : index
    %18 = vector.load %arg5[%c0_11, %c0_12] : memref<1x128xf32, #tpu.memory_space<vmem>>, vector<1x128xf32>
    %19 = vector.broadcast %18 : vector<1x128xf32> to vector<16x128xf32>
    %20 = arith.addf %17, %19 : vector<16x128xf32>
    %21 = arith.truncf %20 : vector<16x128xf32> to vector<16x128xbf16>
    %c0_13 = arith.constant 0 : index
    %c0_14 = arith.constant 0 : index
    %22 = vector.load %arg6[%c0_13, %c0_14] : memref<16x128xbf16, #tpu.memory_space<vmem>>, vector<16x128xbf16>
    tpu.vector_store %arg6[%c0_13, %c0_14], %21 {strides = array<i32>} : memref<16x128xbf16, #tpu.memory_space<vmem>>, vector<16x128xbf16>,
    return
  }
  func.func @transform_0(%arg0: i32) -> (i32, i32) {
    %c0_i32 = arith.constant 0 : i32
    %c0_i32_0 = arith.constant 0 : i32
    return %arg0, %c0_i32 : i32, i32
  }
  func.func @transform_1(%arg0: i32) -> (i32, i32) {
    %c0_i32 = arith.constant 0 : i32
    %c0_i32_0 = arith.constant 0 : i32
    %c0_i32_1 = arith.constant 0 : i32
    return %c0_i32, %c0_i32_0 : i32, i32
  }
  func.func @transform_2(%arg0: i32) -> (i32, i32) {
    %c0_i32 = arith.constant 0 : i32
    %c0_i32_0 = arith.constant 0 : i32
    %c0_i32_1 = arith.constant 0 : i32
    return %c0_i32, %c0_i32_0 : i32, i32
  }
  func.func @transform_3(%arg0: i32) -> (i32, i32) {
    %c0_i32 = arith.constant 0 : i32
    %c0_i32_0 = arith.constant 0 : i32
    %c0_i32_1 = arith.constant 0 : i32
    return %c0_i32, %c0_i32_0 : i32, i32
  }
  func.func @transform_4(%arg0: i32) -> (i32, i32) {
    %c0_i32 = arith.constant 0 : i32
    %c0_i32_0 = arith.constant 0 : i32
    %c0_i32_1 = arith.constant 0 : i32
    return %c0_i32, %c0_i32_0 : i32, i32
  }
  func.func @transform_5(%arg0: i32) -> (i32, i32) {
    %c0_i32 = arith.constant 0 : i32
    %c0_i32_0 = arith.constant 0 : i32
    return %arg0, %c0_i32 : i32, i32
  }
}

</mosaic_0001>

<bundles_post_ra>
// kernel: lstmcrf_forward.1
= control target key start
LH: loop header
LB: loop body
LE: loop exit
PB: predicated region body
PF: predicated region fallthrough
CT: control target
= control target key end

     0   :  { %v221_v0 = vmov 0.0   ;;  %vm222_vm0 = vmmov 0   ;;  %vm47_vm1 = vcmask 261120   ;;  %vm118_vm2 = vcmask 130048   ;;  %s277_s1 = inlined_call_operand.vmem [shape: bf16[32,16], index: 1, kind: input, shape index: {}]   ;;  %s278_s0 = inlined_call_operand.vmem [shape: f32[16,32], index: 0, kind: input, shape index: {}]   ;;  %s279_s3 = inlined_call_operand.vmem [shape: bf16[16,128], index: 3, kind: input, shape index: {}]   ;;  %s280_s2 = inlined_call_operand.vmem [shape: f32[1,16], index: 2, kind: input, shape index: {}]   ;;  %s281_s4 = inlined_call_operand.vmem [shape: f32[1,128], index: 4, kind: input, shape index: {}]   ;;  %s282_s5 = inlined_call_operand.vmem [shape: bf16[16,128], index: 5, kind: output, shape index: {}]  }
   0x1   :  { %198 = vmatprep.subr.bf16.mxu0 %v221_v0  ;;  %v214_v1 = vld [vmem:[%s277_s1 + $0x8] sm:$0xff]   ;;  %202 = vmatprep.mubr.msk.bf16.mxu0 %vm222_vm0, %v221_v0  ;;  %v215_v2 = vld [vmem:[%s277_s1] sm:$0xff]  }
   0x2   :  { %206 = vmatprep.subr.bf16.mxu1 %v221_v0  ;;  %208 = vmatprep.mubr.msk.bf16.mxu1 %vm222_vm0, %v221_v0  ;;  %v21_v3 = vld [vmem:[%s278_s0] sm:$0xff]  ;;  %v22_v4 = vld [vmem:[%s278_s0 + $0x8] sm:$0xff] }
   0x3   :  { %199 = vmatpush3.bf16.msra.mxu0 %v214_v1  ;;  %v23_v5 = vpack.c.bf16 %v22_v4, %v21_v3  ;;  %v216_v6 = vld [vmem:[%s279_s3] sm:$0xff]  }
   0x4   :  { %200 = vmatprep.subr.bf16.mxu0 %v221_v0  ;;  %207 = vmatpush3.bf16.msra.mxu1 %v216_v6  ;;  %v177_v7 = vld [vmem:[%s280_s2] ss:$0 sm:$0xff] }
   0x5   :  { %v181_v26 = vld [vmem:[%s281_s4] ss:$0 sm:$0xff] }
   0x7   :  { %201 = vmatpush3.bf16.msra.mxu0 %v215_v2 }
   0xa   :  { %203 = vmatmul.mubr.msk.bf16.vlgmr.msra.gmra.mxu0 %vm47_vm1, %v23_v5 }
  0xca   :  { %v85_v8 = vpop.f32.mrf.mxu0 }
  0xcb   :  { %v86_v9 = vadd.f32 %v177_v7, %v85_v8 }
  0xcc   :  { %v204_v10 = vpop.f32.mrf.mxu0 }
  0xcd   :  { %v94_v11 = vmul.f32 0.70710677, %v86_v9  ;;  %v92_v19 = vmul.f32 0.5, %v86_v9 }
  0xce   :  { %v88_v12 = vpop.f32.mrf.mxu0 }
  0xcf   :  { %217 = verf.f32 %v94_v11  ;;  %v89_v13 = vadd.f32 %v177_v7, %v88_v12 }
  0xd0   :  { %v205_v14 = vpop.f32.mrf.mxu0 }
  0xd1   :  { %v95_v15 = vmul.f32 0.70710677, %v89_v13  ;;  %v93_v20 = vmul.f32 0.5, %v89_v13 }
  0xd3   :  { %219 = verf.f32 %v95_v15 }
  0xdc   :  { %v218_v16 = vpop.eup %217 }
  0xdd   :  { %v98_v17 = vadd.f32 1.0, %v218_v16 }
  0xdf   :  { %v100_v22 = vmul.f32 %v98_v17, %v92_v19 }
  0xe0   :  { %v220_v18 = vpop.eup %219 }
  0xe1   :  { %v99_v21 = vadd.f32 1.0, %v220_v18 }
  0xe3   :  { %v101_v23 = vmul.f32 %v99_v21, %v93_v20 }
  0xe5   :  { %v102_v24 = vpack.c.bf16 %v101_v23, %v100_v22 }
  0xe7   :  { %209 = vmatmul.mubr.msk.bf16.vlgmr.msra.gmra.mxu1 %vm118_vm2, %v102_v24 }
 0x1a7   :  { %v156_v25 = vpop.f32.mrf.mxu1 }
 0x1a8   :  { %v157_v29 = vadd.f32 %v181_v26, %v156_v25 }
 0x1a9   :  { %v210_v27 = vpop.f32.mrf.mxu1 }
 0x1ab   :  { %v159_v28 = vpop.f32.mrf.mxu1 }
 0x1ac   :  { %v160_v30 = vadd.f32 %v181_v26, %v159_v28 }
 0x1ad   :  { %v211_v31 = vpop.f32.mrf.mxu1 }
 0x1ae   :  { %v191_v32 = vpack.c.bf16 %v160_v30, %v157_v29 }
 0x1b0   :  { %192 = vst [vmem:[%s282_s5] sm:$0xff] %v191_v32  }

</bundles_post_ra>
